<compile_context>
chip_gen: v5e
topology: v5e:2x2
jax: 0.10.0
libtpu: 0.0.40
codegen_flags: <defaults>
</compile_context>

<pallas_src>
import math

import jax
import jax.numpy as jnp
from jax.experimental import pallas as pl
from jax.experimental.pallas import tpu as pltpu


def _round_up(x: int, m: int) -> int:
    return ((x + m - 1) // m) * m


# ----------------------------------------------------------------------------
# Pallas kernel: fused multi-head MLP (all matmuls + bias adds + ReLUs)
# ----------------------------------------------------------------------------
def _make_mlp_kernel(num_hidden: int, num_heads: int):
    """Kernel args: (x, w0, b0, ..., w_last, b_last, o).

    x:      (in_dim, block_b) f32  -- batch on the lane axis
    w_l:    (H, out_l, in_l)  f32  -- PyTorch (out, in) layout, head-stacked
    b_l:    (H, out_l, 1)     f32
    o:      (1, H, block_b)   f32  -- one lane-dense row per head
    """

    def kernel(x_ref, *rest):
        o_ref = rest[-1]
        params = rest[:-1]

        x = x_ref[...]                                          # (in_dim, block_b)
        for h in range(num_heads):                               # static unroll
            a = x
            # Hidden layers: Linear -> ReLU, activations stay (features, block_b).
            for l in range(num_hidden):
                w = params[2 * l][h]                             # (out_l, in_l)
                b = params[2 * l + 1][h]                         # (out_l, 1)
                a = jnp.dot(w, a, preferred_element_type=jnp.float32) + b
                a = jnp.maximum(a, 0.0)

            # Final Linear(h_last -> 1): (1, h_last) @ (h_last, block_b) is
            # already lane-dense, no replication / transpose tricks needed.
            w_last = params[2 * num_hidden][h]                   # (1, h_last)
            b_last = params[2 * num_hidden + 1][h]               # (1, 1)
            row = jnp.dot(w_last, a, preferred_element_type=jnp.float32) + b_last
            o_ref[0, h:h + 1, :] = row.astype(o_ref.dtype)       # (1, block_b) store

    return kernel


# ----------------------------------------------------------------------------
# Wrappers
# ----------------------------------------------------------------------------
def td_network_forward_heads(x_t, weights_h, biases_h, *, block_b=None):
    """Fused multi-head TDNetwork forward.

    x_t:        (in_dim, B) f32, batch on the lane axis.
    weights_h:  list per layer, each (H, out_l, in_l) f32 (PyTorch (out,in) layout).
    biases_h:   list per layer, each (H, out_l, 1) f32.
    Returns:    (H, B, 1) f32.
    """
    in_dim, B = x_t.shape
    num_linear = len(weights_h)
    num_hidden = num_linear - 1
    assert num_hidden >= 1
    H = int(weights_h[0].shape[0])
    assert weights_h[-1].shape[1] == 1, "last layer must map to a single output"

    # Tile selection: multiple of 128 lanes; whole padded batch when tiny,
    # otherwise >=2 tiles so both v7x TensorCores get work (grid is "parallel").
    # Capped so the x tile + f32 activations stay a few MiB of VMEM on every
    # generation (v5e 16 MiB scoped default, v7x 64 MiB physical).
    if block_b is None:
        b128 = _round_up(B, 128)
        block_b = b128 if b128 < 256 else _round_up((b128 + 1) // 2, 128)
        block_b = min(block_b, 8192)
    block_b = max(128, _round_up(int(block_b), 128))

    B_pad = _round_up(B, block_b)
    num_tiles = B_pad // block_b
    x_t = x_t.astype(jnp.float32)
    if B_pad != B:
        # Zero-pad the tail tile instead of asserting divisibility; padded
        # columns are discarded after the kernel.
        x_t = jnp.pad(x_t, ((0, 0), (0, B_pad - B)))

    in_specs = [pl.BlockSpec((in_dim, block_b), lambda i: (0, i))]
    args = [x_t]
    for w, b in zip(weights_h, biases_h):
        w = w.astype(jnp.float32)
        b = b.astype(jnp.float32)
        # Constant block index -> DMA'd once, resident in VMEM for all steps.
        in_specs.append(pl.BlockSpec(w.shape, lambda i: (0, 0, 0)))
        in_specs.append(pl.BlockSpec(b.shape, lambda i: (0, 0, 0)))
        args += [w, b]

    out = pl.pallas_call(
        _make_mlp_kernel(num_hidden, H),
        out_shape=jax.ShapeDtypeStruct((num_tiles, H, block_b), jnp.float32),
        grid=(num_tiles,),
        in_specs=in_specs,
        # Lane-dense output: batch on the lane axis, one row per head.
        out_specs=pl.BlockSpec((1, H, block_b), lambda i: (i, 0, 0)),
        compiler_params=pltpu.CompilerParams(dimension_semantics=("parallel",)),
    )(*args)

    # (num_tiles, H, block_b) -> (H, B, 1), dropping batch padding.
    out = out.transpose(1, 0, 2).reshape(H, B_pad)[:, :B]
    return out[:, :, None]


def td_network_forward(x_t, weights, biases, *, block_b=None):
    """Single TDNetwork forward (matches the PyTorch module).

    x_t: (in_dim, B) f32; weights[i]: (out_i, in_i); biases[i]: (out_i,).
    Returns (B, 1) f32.
    """
    ws = [w[None] for w in weights]
    bs = [b.reshape(1, -1, 1) for b in biases]
    return td_network_forward_heads(x_t, ws, bs, block_b=block_b)[0]


def stack_heads(param_sets):
    """Stack per-head (weights, biases) lists into head-stacked kernel params."""
    num_layers = len(param_sets[0][0])
    ws = [jnp.stack([p[0][l] for p in param_sets], axis=0) for l in range(num_layers)]
    bs = [jnp.stack([p[1][l].reshape(-1, 1) for p in param_sets], axis=0)
          for l in range(num_layers)]
    return ws, bs


# ----------------------------------------------------------------------------
# Deterministic parameter construction (mirrors TDNetwork.__init__)
# ----------------------------------------------------------------------------
def _orthogonal(key, out_dim, in_dim, gain):
    """Deterministic orthogonal (out_dim, in_dim) matrix, gain-scaled."""
    n = max(out_dim, in_dim)
    a = jax.random.normal(key, (n, n), dtype=jnp.float32)
    q, r = jnp.linalg.qr(a)
    q = q * jnp.sign(jnp.diag(r))
    return gain * q[:out_dim, :in_dim]


def build_td_network_params(key, state_dim, action_dim, layer_sizes, net_type="Q"):
    """Returns PyTorch-layout params: weights[i] (out_i, in_i), biases[i] (out_i,)."""
    assert net_type in ("Q", "V")
    input_size = state_dim + action_dim if net_type == "Q" else state_dim
    dims = [input_size] + list(layer_sizes) + [1]

    weights, biases = [], []
    gain = math.sqrt(2.0)
    for i in range(len(dims) - 1):
        key, wk, bk = jax.random.split(key, 3)
        in_d, out_d = dims[i], dims[i + 1]
        w = _orthogonal(wk, out_d, in_d, gain)        # nn.init.orthogonal_(gain=sqrt(2))
        bound = 1.0 / math.sqrt(in_d)                 # nn.Linear default bias init
        b = jax.random.uniform(bk, (out_d,), jnp.float32, -bound, bound)
        weights.append(w)
        biases.append(b)
    return weights, biases


# ----------------------------------------------------------------------------
# Pure-JAX f32 reference (true PyTorch semantics, no quantization)
# ----------------------------------------------------------------------------
def reference_forward(x, weights, biases):
    h = x
    for w, b in zip(weights[:-1], biases[:-1]):
        h = jnp.maximum(h @ w.T + b, 0.0)
    return h @ weights[-1].T + biases[-1]


if __name__ == "__main__":
    # Small Q-network config consistent with the module.
    state_dim, action_dim = 16, 8
    layer_sizes = [32, 32]
    batch = 256

    key = jax.random.PRNGKey(0)
    key, p1, p2, sk, ak = jax.random.split(key, 5)
    w1, b1 = build_td_network_params(p1, state_dim, action_dim, layer_sizes, net_type="Q")

    state = jax.random.normal(sk, (batch, state_dim), dtype=jnp.float32)
    action = jax.random.normal(ak, (batch, action_dim), dtype=jnp.float32)
    # Batch-on-lanes input built directly as (in_dim, B): the concat is done in
    # transposed layout so no extra wrapper-side transpose pass of x is needed.
    x_t = jnp.concatenate([state.T, action.T], axis=0)        # (24, B)
    x = x_t.T                                                 # (B, 24), reference only

    # Single Q head; block_b=128 gives grid=(2,) so both v7x TCs get a tile.
    out = jax.block_until_ready(td_network_forward(x_t, w1, b1, block_b=128))
    ref = reference_forward(x, w1, b1)
    assert out.shape == (batch, 1)
    assert jnp.allclose(out, ref, atol=2e-3, rtol=2e-3), "single-head mismatch vs reference"

    # IQL twin-Q: both heads fused into one pallas_call; the streamed x tile is
    # reused across heads (weights are VMEM-resident, zero extra HBM traffic).
    w2, b2 = build_td_network_params(p2, state_dim, action_dim, layer_sizes, net_type="Q")
    ws, bs = stack_heads([(w1, b1), (w2, b2)])
    out2 = jax.block_until_ready(td_network_forward_heads(x_t, ws, bs, block_b=128))
    ref2 = jnp.stack([reference_forward(x, w1, b1), reference_forward(x, w2, b2)], axis=0)
    assert out2.shape == (2, batch, 1)
    assert jnp.allclose(out2, ref2, atol=2e-3, rtol=2e-3), "twin-Q mismatch vs reference"

    print("KERNEL_OK")
</pallas_src>

<mosaic_0001>
module attributes {stable_mosaic.version = 11 : i64} {
  func.func @kernel(%arg0: i32, %arg1: memref<24x128xf32, #tpu.memory_space<vmem>>, %arg2: memref<1x32x24xf32, #tpu.memory_space<vmem>>, %arg3: memref<1x32x1xf32, #tpu.memory_space<vmem>>, %arg4: memref<1x32x32xf32, #tpu.memory_space<vmem>>, %arg5: memref<1x32x1xf32, #tpu.memory_space<vmem>>, %arg6: memref<1x1x32xf32, #tpu.memory_space<vmem>>, %arg7: memref<1x1x1xf32, #tpu.memory_space<vmem>>, %arg8: memref<1x1x128xf32, #tpu.memory_space<vmem>>) attributes {dimension_semantics = [#tpu.dimension_semantics<parallel>], iteration_bounds = array<i64: 2>, scalar_prefetch = 0 : i64, scratch_operands = 0 : i64, tpu.core_type = #tpu.core_type<tc>, window_params = [{transform_indices = @transform_0, window_bounds = array<i64: 24, 128>}, {pipeline_mode = #tpu.pipeline_mode<synchronous>, transform_indices = @transform_1, window_bounds = array<i64: 1, 32, 24>}, {pipeline_mode = #tpu.pipeline_mode<synchronous>, transform_indices = @transform_2, window_bounds = array<i64: 1, 32, 1>}, {pipeline_mode = #tpu.pipeline_mode<synchronous>, transform_indices = @transform_3, window_bounds = array<i64: 1, 32, 32>}, {pipeline_mode = #tpu.pipeline_mode<synchronous>, transform_indices = @transform_4, window_bounds = array<i64: 1, 32, 1>}, {pipeline_mode = #tpu.pipeline_mode<synchronous>, transform_indices = @transform_5, window_bounds = array<i64: 1, 1, 32>}, {pipeline_mode = #tpu.pipeline_mode<synchronous>, transform_indices = @transform_6, window_bounds = array<i64: 1, 1, 1>}, {transform_indices = @transform_7, window_bounds = array<i64: 1, 1, 128>}]} {
    %c0 = arith.constant 0 : index
    %c0_0 = arith.constant 0 : index
    %0 = vector.load %arg1[%c0, %c0_0] : memref<24x128xf32, #tpu.memory_space<vmem>>, vector<24x128xf32>
    %c0_1 = arith.constant 0 : index
    %c0_2 = arith.constant 0 : index
    %c0_3 = arith.constant 0 : index
    %1 = vector.load %arg2[%c0_1, %c0_2, %c0_3] : memref<1x32x24xf32, #tpu.memory_space<vmem>>, vector<1x32x24xf32>
    %2 = vector.shape_cast %1 : vector<1x32x24xf32> to vector<32x24xf32>
    %c0_4 = arith.constant 0 : index
    %c0_5 = arith.constant 0 : index
    %c0_6 = arith.constant 0 : index
    %3 = vector.load %arg3[%c0_4, %c0_5, %c0_6] : memref<1x32x1xf32, #tpu.memory_space<vmem>>, vector<1x32x1xf32>
    %4 = vector.shape_cast %3 : vector<1x32x1xf32> to vector<32x1xf32>
    %cst = arith.constant dense<0.000000e+00> : vector<32x128xf32>
    %5 = tpu.matmul %2, %0, %cst {dimension_numbers = #tpu.dot_dimension_numbers<[1], [0], [0], [1], [0, 0, 1, 1], [], []>} : vector<32x24xf32>, vector<24x128xf32>, vector<32x128xf32> -> vector<32x128xf32>
    %6 = vector.broadcast %4 : vector<32x1xf32> to vector<32x128xf32>
    %7 = arith.addf %5, %6 : vector<32x128xf32>
    %cst_7 = arith.constant 0.000000e+00 : f32
    %8 = vector.broadcast %cst_7 : f32 to vector<32x128xf32>
    %9 = arith.maximumf %7, %8 : vector<32x128xf32>
    %c0_8 = arith.constant 0 : index
    %c0_9 = arith.constant 0 : index
    %c0_10 = arith.constant 0 : index
    %10 = vector.load %arg4[%c0_8, %c0_9, %c0_10] : memref<1x32x32xf32, #tpu.memory_space<vmem>>, vector<1x32x32xf32>
    %11 = vector.shape_cast %10 : vector<1x32x32xf32> to vector<32x32xf32>
    %c0_11 = arith.constant 0 : index
    %c0_12 = arith.constant 0 : index
    %c0_13 = arith.constant 0 : index
    %12 = vector.load %arg5[%c0_11, %c0_12, %c0_13] : memref<1x32x1xf32, #tpu.memory_space<vmem>>, vector<1x32x1xf32>
    %13 = vector.shape_cast %12 : vector<1x32x1xf32> to vector<32x1xf32>
    %cst_14 = arith.constant dense<0.000000e+00> : vector<32x128xf32>
    %14 = tpu.matmul %11, %9, %cst_14 {dimension_numbers = #tpu.dot_dimension_numbers<[1], [0], [0], [1], [0, 0, 1, 1], [], []>} : vector<32x32xf32>, vector<32x128xf32>, vector<32x128xf32> -> vector<32x128xf32>
    %15 = vector.broadcast %13 : vector<32x1xf32> to vector<32x128xf32>
    %16 = arith.addf %14, %15 : vector<32x128xf32>
    %cst_15 = arith.constant 0.000000e+00 : f32
    %17 = vector.broadcast %cst_15 : f32 to vector<32x128xf32>
    %18 = arith.maximumf %16, %17 : vector<32x128xf32>
    %c0_16 = arith.constant 0 : index
    %c0_17 = arith.constant 0 : index
    %c0_18 = arith.constant 0 : index
    %19 = vector.load %arg6[%c0_16, %c0_17, %c0_18] : memref<1x1x32xf32, #tpu.memory_space<vmem>>, vector<1x1x32xf32>
    %20 = vector.shape_cast %19 : vector<1x1x32xf32> to vector<1x32xf32>
    %c0_19 = arith.constant 0 : index
    %c0_20 = arith.constant 0 : index
    %c0_21 = arith.constant 0 : index
    %21 = vector.load %arg7[%c0_19, %c0_20, %c0_21] : memref<1x1x1xf32, #tpu.memory_space<vmem>>, vector<1x1x1xf32>
    %22 = vector.shape_cast %21 : vector<1x1x1xf32> to vector<1x1xf32>
    %cst_22 = arith.constant dense<0.000000e+00> : vector<1x128xf32>
    %23 = tpu.matmul %20, %18, %cst_22 {dimension_numbers = #tpu.dot_dimension_numbers<[1], [0], [0], [1], [0, 0, 1, 1], [], []>} : vector<1x32xf32>, vector<32x128xf32>, vector<1x128xf32> -> vector<1x128xf32>
    %24 = vector.broadcast %22 : vector<1x1xf32> to vector<1x128xf32>
    %25 = arith.addf %23, %24 : vector<1x128xf32>
    %c0_23 = arith.constant 0 : index
    %c0_24 = arith.constant 0 : index
    %c0_25 = arith.constant 0 : index
    %26 = vector.load %arg8[%c0_23, %c0_24, %c0_25] : memref<1x1x128xf32, #tpu.memory_space<vmem>>, vector<1x1x128xf32>
    %27 = vector.shape_cast %26 : vector<1x1x128xf32> to vector<1x128xf32>
    %28 = vector.shape_cast %25 : vector<1x128xf32> to vector<1x1x128xf32>
    tpu.vector_store %arg8[%c0_23, %c0_24, %c0_25], %28 {strides = array<i32>} : memref<1x1x128xf32, #tpu.memory_space<vmem>>, vector<1x1x128xf32>,
    return
  }
  func.func @transform_0(%arg0: i32) -> (i32, i32) {
    %c0_i32 = arith.constant 0 : i32
    %c0_i32_0 = arith.constant 0 : i32
    return %c0_i32, %arg0 : i32, i32
  }
  func.func @transform_1(%arg0: i32) -> (i32, i32, i32) {
    %c0_i32 = arith.constant 0 : i32
    %c0_i32_0 = arith.constant 0 : i32
    %c0_i32_1 = arith.constant 0 : i32
    %c0_i32_2 = arith.constant 0 : i32
    return %c0_i32, %c0_i32_0, %c0_i32_1 : i32, i32, i32
  }
  func.func @transform_2(%arg0: i32) -> (i32, i32, i32) {
    %c0_i32 = arith.constant 0 : i32
    %c0_i32_0 = arith.constant 0 : i32
    %c0_i32_1 = arith.constant 0 : i32
    %c0_i32_2 = arith.constant 0 : i32
    return %c0_i32, %c0_i32_0, %c0_i32_1 : i32, i32, i32
  }
  func.func @transform_3(%arg0: i32) -> (i32, i32, i32) {
    %c0_i32 = arith.constant 0 : i32
    %c0_i32_0 = arith.constant 0 : i32
    %c0_i32_1 = arith.constant 0 : i32
    %c0_i32_2 = arith.constant 0 : i32
    return %c0_i32, %c0_i32_0, %c0_i32_1 : i32, i32, i32
  }
  func.func @transform_4(%arg0: i32) -> (i32, i32, i32) {
    %c0_i32 = arith.constant 0 : i32
    %c0_i32_0 = arith.constant 0 : i32
    %c0_i32_1 = arith.constant 0 : i32
    %c0_i32_2 = arith.constant 0 : i32
    return %c0_i32, %c0_i32_0, %c0_i32_1 : i32, i32, i32
  }
  func.func @transform_5(%arg0: i32) -> (i32, i32, i32) {
    %c0_i32 = arith.constant 0 : i32
    %c0_i32_0 = arith.constant 0 : i32
    %c0_i32_1 = arith.constant 0 : i32
    %c0_i32_2 = arith.constant 0 : i32
    return %c0_i32, %c0_i32_0, %c0_i32_1 : i32, i32, i32
  }
  func.func @transform_6(%arg0: i32) -> (i32, i32, i32) {
    %c0_i32 = arith.constant 0 : i32
    %c0_i32_0 = arith.constant 0 : i32
    %c0_i32_1 = arith.constant 0 : i32
    %c0_i32_2 = arith.constant 0 : i32
    return %c0_i32, %c0_i32_0, %c0_i32_1 : i32, i32, i32
  }
  func.func @transform_7(%arg0: i32) -> (i32, i32, i32) {
    %c0_i32 = arith.constant 0 : i32
    %c0_i32_0 = arith.constant 0 : i32
    %c0_i32_1 = arith.constant 0 : i32
    return %arg0, %c0_i32, %c0_i32_0 : i32, i32, i32
  }
}

</mosaic_0001>

<bundles_post_ra>
// kernel: tpu_custom_call.1
= control target key start
LH: loop header
LB: loop body
LE: loop exit
PB: predicated region body
PF: predicated region fallthrough
CT: control target
= control target key end

     0   :  { %s909_s0 = inlined_call_operand.vmem [shape: f32[24,256], index: 0, kind: input, shape index: {}]   ;;  %s910_s1 = inlined_call_operand.vmem [shape: f32[1,32,24], index: 1, kind: input, shape index: {}]   ;;  %s911_s2 = inlined_call_operand.vmem [shape: f32[1,32,1], index: 2, kind: input, shape index: {}]   ;;  %s912_s3 = inlined_call_operand.vmem [shape: f32[1,32,32], index: 3, kind: input, shape index: {}]   ;;  %s913_s4 = inlined_call_operand.vmem [shape: f32[1,32,1], index: 4, kind: input, shape index: {}]   ;;  %s914_s5 = inlined_call_operand.vmem [shape: f32[1,1,32], index: 5, kind: input, shape index: {}]   ;;  %s915_s6 = inlined_call_operand.<no memory space> [shape: f32[1,1,1], index: 6, kind: input, shape index: {}]   ;;  %s916_s7 = inlined_call_operand.hbm [shape: f32[2,1,128], index: 7, kind: output, shape index: {}]  }
   0x1   :  { %v12_v0 = vstv %s915_s6 }
   0x2   :  { %13 = vst [vmem:[#allocation2] sm:$0x1] %v12_v0 }
   0x3   :  { %14 = vsyncpa [#allocation5], 0 }
   0x4   :  { %16 = vsyncpa [#allocation5 + $0x1], 0  ;;  %s754_s26 = smov 0   ;;  %s756_s27 = smov 0  }
   0x5   :  { %s758_s28 = smov 0   ;;  %s760_s29 = smov 0  }
   0x6 LB: > { %s577_s6 = sadd.s32 4294967295, %s708_s29   ;;  %s578_s30 = sadd.s32 4294967294, %s708_s29   ;;  %s708_s29 = sphi %s760_s29, %s922_s29   ;;  %s704_s28 = sphi %s758_s28, %s921_s28   ;;  %s700_s27 = sphi %s756_s27, %s920_s27   ;;  %s696_s26 = sphi %s754_s26, %s919_s26  }
   0x7   : > { %s777_s8 = sadd.s32 1, %s708_s29   ;;  %s29_s9 = sadd.s32 1, %s704_s28 }
   0x8   : > { %s26_s10 = ssub.s32 %s708_s29, %s777_s8  ;;  %p36_p0 = scmp.ne.s32.totalorder %s704_s28, %s700_s27 }
   0x9   : > { %p27_p1 = scmp.eq.s32.totalorder %s26_s10, 0  ;;  %p37_p2 = scmp.eq.s32.totalorder %s708_s29, 0 }
   0xa   : > { %p192_p3 = scmp.eq.s32.totalorder %s577_s6, 1  ;;  %p197_p4 = scmp.ne.s32.totalorder %s700_s27, %s696_s26 }
   0xb   : > { %s790_s11 = scalar_select %p27_p1, %s704_s28, %s29_s9  }
   0xc   : > { %p38_p5 = por %p37_p2, %p36_p0  ;;  %p792_p6 = por %p192_p3, %p36_p0 }
   0xd   : > { %p198_p7 = scmp.eq.s32.totalorder %s578_s30, 1  ;;  %p580_p9 = scmp.ge.s32.totalorder %s708_s29, 2 }
   0xf   : > { %p796_p8 = por %p198_p7, %p197_p4  ;;  %232 = sbr.rel (%p580_p9) target bundleno = 27 (0x1b), region = 40 }
  0x14   : > { %235 = sbr.rel (!%p38_p5) target bundleno = 27 (0x1b), region = 44  ;;  %s237_s14 = sand.u32 (%p38_p5), 1, %s704_s28  }
  0x15   : > { %s581_s15 = sshll.u32 (%p38_p5), %s708_s29, 3  ;;  %s601_s16 = smul.u32 (%p38_p5), 24, %s237_s14 }
  0x16   : > { %s241_s19 = scalar_lea.vmem (%p38_p5), %s909_s0, %s581_s15 }
  0x17   : > { %v274_v1 = vld [vmem:[%s241_s19] sm:$0xff] (%p38_p5)  ;;  %v276_v2 = vld [vmem:[%s241_s19 + $0x10] sm:$0xff] (%p38_p5)  ;;  %s239_s20 = scalar_lea.vmem (%p38_p5), [#allocation3], %s601_s16 }
  0x18   : > { %v278_v3 = vld [vmem:[%s241_s19 + $0x20] sm:$0xff] (%p38_p5)  ;;  %275 = vst [vmem:[%s239_s20] sm:$0xff] (%p38_p5), %v274_v1 }
  0x19   : > { %277 = vst [vmem:[%s239_s20 + $0x8] sm:$0xff] %v276_v2 }
  0x1a   : > { %279 = vst [vmem:[%s239_s20 + $0x10] sm:$0xff] %v278_v3 }
  0x1b PF: > { %p582_p10 = scmp.ge.s32.totalorder %s708_s29, 1  ;;  %p284_p11 = scmp.lt.s32.totalorder %s708_s29, 3 }
  0x1d   : > { %p285_p12 = pnand %p582_p10, %p284_p11 }
  0x1e   : > { %s811_s21 = sand.u32 (!%p285_p12), 1, %s700_s27   ;;  %s513_s17 = scalar_lea.hbm (!%p285_p12), %s916_s7, %s577_s6 }
  0x1f   : > { %288 = sbr.rel (%p285_p12) target bundleno = 491 (0x1eb), region = 82  ;;  %s320_s18 = scalar_lea.vmem (!%p285_p12), [#allocation4], %s811_s21 }
  0x20   : > { %s602_s30 = smul.u32 (!%p285_p12), 24, %s811_s21  ;;  %s515_s19 = sshll.u32 (!%p285_p12), %s320_s18, 4  ;;  %s516_s19 = int_to_ptr.vmem [resolvable:$true] %s515_s19 }
  0x21   : > { %s517_s20 = sshll.u32 (!%p285_p12), %s513_s17, 4  ;;  %s505_s22 = scalar_lea.sflag (!%p285_p12), [#allocation5], %s811_s21  ;;  %s518_s20 = int_to_ptr.hbm [resolvable:$true] %s517_s20 }
  0x22   : > { %s293_s9 = scalar_lea.vmem (!%p285_p12), [#allocation3], %s602_s30  ;;  %s660_s23 = sshra.s32 (!%p285_p12), %s518_s20, 4  ;;  %s661_s23 = int_to_ptr.hbm [resolvable:$true] %s660_s23 }
  0x23   : > { %s662_s24 = scalar_lea.hbm (!%p285_p12), %s661_s23, 1  ;;  %s666_s30 = scalar_lea.hbm (!%p285_p12), %s916_s7, 2 }
  0x24   : > { %v331_v4 = vld [vmem:[%s911_s2 + $0x18] sm:$0xff]  ;;  %v329_v5 = vld [vmem:[%s911_s2 + $0x8] sm:$0xff]  ;;  %v710_v6 = vmov 0   ;;  %v324_v10 = vld [vmem:[%s910_s1] sm:$0xff]  ;;  %vm352_vm0 = vcmask 195584   ;;  %vm426_vm1 = vcmask 261120   ;;  %p663_p13 = scmp.ne.s32.totalorder %s661_s23, %s662_s24  ;;  %p667_p2 = scmp.lt.s32.totalorder %s661_s23, %s916_s7 }
  0x25   : > { %644 = vset.pattern.permute.xlu1 %v710_v6  ;;  %643 = vset.pattern.permute.xlu0 %v710_v6  ;;  %v323_v7 = vld [vmem:[%s293_s9 + $0x10] sm:$0xff]  ;;  %v322_v8 = vld [vmem:[%s293_s9 + $0x8] sm:$0xff]  ;;  %v321_v9 = vld [vmem:[%s293_s9] sm:$0xff]  ;;  %p668_p3 = scmp.lt.s32.totalorder %s666_s30, %s662_s24 }
  0x26   : > { %349 = vperm.xlu0 %643, %v331_v4   ;;  %339 = vperm.xlu1 %644, %v329_v5   ;;  %v327_v11 = vld [vmem:[%s910_s1 + $0x18] sm:$0xff]  ;;  %v330_v12 = vld [vmem:[%s911_s2 + $0x10] sm:$0xff]  ;;  %v328_v13 = vld [vmem:[%s911_s2] sm:$0xff]  ;;  %p664_p0 = pnand %p663_p13, %p792_p6 }
  0x27   : > { %645 = vset.pattern.permute.xlu2 %v710_v6  ;;  %378 = vmatpush.msra.mxu0 %v323_v7  ;;  %v325_v14 = vld [vmem:[%s910_s1 + $0x8] sm:$0xff]  ;;  %v402_v16 = vld [vmem:[%s913_s4] sm:$0xff]  ;;  %v326_v17 = vld [vmem:[%s910_s1 + $0x10] sm:$0xff]  ;;  %p669_p4 = por %p668_p3, %p667_p2 }
  0x28   : > { %594 = vmatpush.msra.mxu1 %v323_v7  ;;  %v403_v15 = vld [vmem:[%s913_s4 + $0x8] sm:$0xff]  ;;  %v405_v25 = vld [vmem:[%s913_s4 + $0x18] sm:$0xff]  ;;  %v404_v29 = vld [vmem:[%s913_s4 + $0x10] sm:$0xff]  ;;  %p665_p1 = pneg %p664_p0 }
  0x29   : > { %379 = vmatpush.msra.mxu0 %v322_v8  ;;  %423 = vperm.xlu2 %645, %v405_v25   ;;  %v398_v36 = vld [vmem:[%s912_s3] sm:$0xff]  ;;  %v399_v37 = vld [vmem:[%s912_s3 + $0x8] sm:$0xff]  ;;  %v400_v39 = vld [vmem:[%s912_s3 + $0x10] sm:$0xff] }
  0x2a   : > { %595 = vmatpush.msra.mxu1 %v322_v8  ;;  %v473_v38 = vld [vmem:[#allocation2] sm:$0x1]  ;;  %v401_v40 = vld [vmem:[%s912_s3 + $0x18] sm:$0xff]  ;;  %p670_p5 = pnand %p669_p4, %p665_p1 }
  0x2b   : > { %380 = vmatpush.msra.mxu0 %v321_v9  ;;  %v472_v57 = vld [vmem:[%s914_s5] sm:$0x1] }
  0x2c   : > { %596 = vmatpush.msra.mxu1 %v321_v9  ;;  %583 = vmatmul.msk.f32.vlgmr.msra.gmra.mxu0 %vm352_vm0, %v324_v10 }
  0x2d   : > { %586 = vmatmul.msk.f32.vlgmr.msra.gmra.mxu1 %vm352_vm0, %v327_v11 }
  0x2e   : > { %344 = vperm.xlu0 %643, %v330_v12   ;;  %334 = vperm.xlu1 %644, %v328_v13  }
  0x31   : > { %418 = vperm.xlu2 %645, %v404_v29  }
  0x34   : > { %584 = vmatmul.msk.f32.gmra.mxu0 %vm352_vm0, %v325_v14 }
  0x36   : > { %413 = vperm.xlu0 %643, %v403_v15   ;;  %408 = vperm.xlu1 %644, %v402_v16  }
  0x39   : > { %476 = vperm.xlu2 %645, %v473_v38  }
  0x3c   : > { %585 = vmatmul.msk.f32.gmra.mxu0 %vm352_vm0, %v326_v17 }
  0x83   : > { %v424_v42 = vpop.permute.xlu2 %423 }
  0x8b   : > { %v419_v44 = vpop.permute.xlu2 %418 }
  0x93   : > { %v477_v58 = vpop.permute.xlu2 %476 }
  0x94   : > { %v479_v59 = vperm.slane %v477_v58, 0 }
  0x98   : > { %v350_v18 = vpop.permute.xlu0 %349  ;;  %v340_v23 = vpop.permute.xlu1 %339 }
  0xa0   : > { %v345_v26 = vpop.permute.xlu0 %344  ;;  %v335_v27 = vpop.permute.xlu1 %334 }
  0xa8   : > { %v414_v48 = vpop.permute.xlu0 %413  ;;  %v409_v52 = vpop.permute.xlu1 %408 }
  0xa9   : > { %v382_v19 = vpop.f32.mrf.mxu0 }
  0xaa   : > { %v391_v20 = vpop.f32.mrf.mxu1  ;;  %v383_v32 = vadd.f32 %v382_v19, %v335_v27 }
  0xab   : > { %v392_v21 = vadd.f32 %v391_v20, %v350_v18 }
  0xac   : > { %v394_v35 = vmax.f32 %v383_v32, 0.0 }
  0xad   : > { %v397_v22 = vmax.f32 %v392_v21, 0.0 }
  0xaf   : > { %451 = vmatpush.msrb.mxu1 %v397_v22  ;;  %597 = vmatpush.msra.mxu3 %v397_v22 }
  0xb1   : > { %v385_v24 = vpop.f32.mrf.mxu0 }
  0xb2   : > { %v386_v30 = vadd.f32 %v385_v24, %v340_v23 }
  0xb4   : > { %v395_v34 = vmax.f32 %v386_v30, 0.0 }
  0xb9   : > { %v388_v28 = vpop.f32.mrf.mxu0 }
  0xba   : > { %v389_v31 = vadd.f32 %v388_v28, %v345_v26 }
  0xbc   : > { %v396_v33 = vmax.f32 %v389_v31, 0.0 }
  0xbe   : > { %452 = vmatpush.msrb.mxu1 %v396_v33  ;;  %598 = vmatpush.msra.mxu3 %v396_v33 }
  0xc0   : > { %453 = vmatpush.msrb.mxu1 %v395_v34  ;;  %599 = vmatpush.msra.mxu3 %v395_v34 }
  0xc2   : > { %454 = vmatpush.msrb.mxu1 %v394_v35  ;;  %600 = vmatpush.msra.mxu3 %v394_v35 }
  0xc3   : > { %587 = vmatmul.msk.f32.vlgmr.msrb.gmra.mxu1 %vm426_vm1, %v398_v36  ;;  %588 = vmatmul.msk.f32.vlgmr.msra.gmra.mxu3 %vm426_vm1, %v399_v37 }
  0xcb   : > { %589 = vmatmul.msk.f32.gmra.mxu3 %vm426_vm1, %v400_v39 }
  0xd3   : > { %590 = vmatmul.msk.f32.gmra.mxu3 %vm426_vm1, %v401_v40 }
 0x140   : > { %v456_v49 = vpop.f32.mrf.mxu1 }
 0x141   : > { %v457_v53 = vadd.f32 %v456_v49, %v409_v52 }
 0x143   : > { %v468_v56 = vmax.f32 %v457_v53, 0.0 }
 0x146   : > { %v459_v41 = vpop.f32.mrf.mxu3 }
 0x147   : > { %v460_v50 = vadd.f32 %v459_v41, %v414_v48 }
 0x149   : > { %v469_v55 = vmax.f32 %v460_v50, 0.0 }
 0x14e   : > { %v462_v43 = vpop.f32.mrf.mxu3 }
 0x14f   : > { %v463_v46 = vadd.f32 %v462_v43, %v419_v44 }
 0x151   : > { %v470_v54 = vmax.f32 %v463_v46, 0.0 }
 0x156   : > { %v465_v45 = vpop.f32.mrf.mxu3 }
 0x157   : > { %v466_v47 = vadd.f32 %v465_v45, %v424_v42 }
 0x159   : > { %v471_v51 = vmax.f32 %v466_v47, 0.0 }
 0x15b   : > { %495 = vmatpush.msra.mxu2 %v471_v51 }
 0x15d   : > { %496 = vmatpush.msra.mxu2 %v470_v54 }
 0x15f   : > { %497 = vmatpush.msra.mxu2 %v469_v55 }
 0x161   : > { %498 = vmatpush.msra.mxu2 %v468_v56 }
 0x162   : > { %591 = vmatmul.msk.f32.vlgmr.msra.gmra.mxu2 %vm426_vm1, %v472_v57 }
 0x1e5   : > { %v500_v60 = vpop.f32.mrf.mxu2 }
 0x1e6   : > { %v501_v61 = vadd.f32 %v500_v60, %v479_v59 }
 0x1e8   : > { %503 = vst [vmem:[%s320_s18] sm:$0x1] %v501_v61 }
 0x1e9   : > { %673 = shalt.err (!%p670_p5)
}
 0x1ea   : > { %603 = dma.vmem_to_hbm [thread:$0]  (%p792_p6), %s516_s19, 16, %s518_s20, %s505_s22  }
 0x1eb PF: > { %s529_s21 = sand.u32 1, %s696_s26   ;;  %p606_p7 = pnand %p580_p9, %p796_p8 }
 0x1ec   : > { %s530_s14 = scalar_lea.sflag [#allocation5], %s529_s21 }
 0x1ed   : > { %p607_p10 = pneg %p606_p7 }
 0x1ef   : > { %691 = dma.done.wait (%p607_p10), %s530_s14, 16  }
 0x1f0   : > { %693 = vsyncadd (%p607_p10), %s530_s14, 4294967280  ;;  %p19_p11 = scmp.ge.s32.totalorder %s777_s8, 4   ;;  %s919_s26 = smov %s700_s27 }
 0x1f1   : > { %s920_s27 = smov %s704_s28  ;;  %s921_s28 = smov %s790_s11 }
 0x1f2   : > { %s922_s29 = smov %s777_s8  ;;  %21 = sbr.rel (!%p19_p11) target bundleno = 6 (0x6), region = 126 }
 0x1f7   :  { %535 = vsyncpa [#allocation5], 1 }
 0x1f8   :  { %537 = vsyncpa [#allocation5 + $0x1], 1 }

</bundles_post_ra>
